<compile_context>
chip_gen: v6e
topology: v6e:2x2x1
jax: 0.10.0
libtpu: 0.0.40
codegen_flags: <defaults>
</compile_context>

<pallas_src>
import functools
import math

import jax
import jax.numpy as jnp
from jax.experimental import pallas as pl
from jax.experimental.pallas import tpu as pltpu


def _next_pow2(x):
    return 1 << (int(x) - 1).bit_length() if x > 1 else 1


def _pairwise_kernel(q_col_ref, psi_col_ref, eid_col_ref,
                     q_row_ref, psi_row_ref, eid_row_ref,
                     sq_ref, cnt_ref, *, dpsi_threshold, block_m):
    """One (row-block i, col-block j) tile of the pairwise matrices."""
    j = pl.program_id(1)

    @pl.when(j == 0)
    def _init():
        sq_ref[...] = jnp.zeros_like(sq_ref)
        cnt_ref[...] = jnp.zeros_like(cnt_ref)

    qc = q_col_ref[...]              # (BM, 1)   pred - logit(psi)
    qr = q_row_ref[...]              # (1, BN)
    sc = psi_col_ref[...]            # (BM, 1)   raw psi (NaN in padding)
    sr = psi_row_ref[...]            # (1, BN)
    ec = eid_col_ref[...]            # (BM, 1)   int32 event ids
    er = eid_row_ref[...]            # (1, BN)

    d = qc - qr                                                   # (BM, BN)
    # NaN-padded psi makes |sc - sr| >= thr evaluate False for every pair that
    # touches a padding element (including pad self-pairs on the diagonal).
    m = (ec == er) & (jnp.abs(sc - sr) >= dpsi_threshold)         # bool (BM, BN)

    sq = jnp.where(m, d * d, jnp.float32(0.0))
    ones = jnp.where(m, jnp.float32(1.0), jnp.float32(0.0))

    bn = sq.shape[1]
    # Fold sublanes (BM -> 8) only; keep lanes wide.  These are cheap vector
    # adds; the single cross-lane reduce happens once, in the wrapper.
    sq_ref[...] += sq.reshape(block_m // 8, 8, bn).sum(axis=0)
    cnt_ref[...] += ones.reshape(block_m // 8, 8, bn).sum(axis=0)


def pairwise_mse_bce_loss(pred_psi_val, psi_val, event_id=None, *,
                          dPSI_threshold, mse_loss_weight_multiplier=10.0,
                          use_BCE_loss_only=False,
                          block_m=512, block_n=1024, eps=1e-7):
    pred = pred_psi_val.reshape(-1).astype(jnp.float32)
    psi = psi_val.reshape(-1).astype(jnp.float32)
    n = pred.shape[0]

    # BCE-with-logits (mean reduction) -- O(N), plain XLA.
    bce = jnp.mean(jnp.maximum(pred, 0.0) - pred * psi
                   + jnp.log1p(jnp.exp(-jnp.abs(pred))))
    if use_BCE_loss_only:                       # static flag, like the kwarg
        return bce

    assert block_m % 8 == 0 and block_n % 128 == 0
    assert block_m & (block_m - 1) == 0 and block_n & (block_n - 1) == 0, \
        "block sizes must be powers of two (keeps padding minimal)"
    eid = event_id.reshape(-1).astype(jnp.int32)

    # Precompute q = pred - logit(clip(psi, eps, 1-eps)) once: the kernel's
    # (pred_i - pred_j) - (logit_i - logit_j) becomes simply q_i - q_j.
    z = jnp.clip(psi, eps, 1.0 - eps)
    q = pred - jnp.log(z / (1.0 - z))

    # Clamp block sizes for small inputs (no huge padding for tiny N); with
    # power-of-two blocks lcm(bm, bn) == max(bm, bn).
    np2 = _next_pow2(n)
    bm = min(block_m, max(8, np2))
    bn = min(block_n, max(128, np2))
    lcm = math.lcm(bm, bn)
    n_pad = ((n + lcm - 1) // lcm) * lcm
    pad = n_pad - n

    q_p = jnp.pad(q, (0, pad))
    # NaN psi padding: every pair involving a pad element fails the threshold
    # test (IEEE compare with NaN is False), so no validity mask is needed.
    psi_p = jnp.pad(psi, (0, pad), constant_values=jnp.nan)
    # Unique, extremely negative event ids for padding (defense in depth).
    pad_ids = jnp.iinfo(jnp.int32).min + jnp.arange(pad, dtype=jnp.int32)
    eid_p = jnp.concatenate([eid, pad_ids])

    grid_i = n_pad // bm
    grid_j = n_pad // bn

    col_spec = pl.BlockSpec((bm, 1), lambda i, j: (i, 0))
    row_spec = pl.BlockSpec((1, bn), lambda i, j: (0, j))
    out_spec = pl.BlockSpec((8, bn), lambda i, j: (i, 0))

    kernel = functools.partial(_pairwise_kernel,
                               dpsi_threshold=float(dPSI_threshold),
                               block_m=bm)

    sq_part, cnt_part = pl.pallas_call(
        kernel,
        out_shape=(jax.ShapeDtypeStruct((grid_i * 8, bn), jnp.float32),
                   jax.ShapeDtypeStruct((grid_i * 8, bn), jnp.float32)),
        grid_spec=pltpu.PrefetchScalarGridSpec(
            num_scalar_prefetch=0,
            grid=(grid_i, grid_j),
            in_specs=[col_spec, col_spec, col_spec,
                      row_spec, row_spec, row_spec],
            out_specs=[out_spec, out_spec]),
        compiler_params=pltpu.CompilerParams(
            dimension_semantics=("parallel", "arbitrary"),
            vmem_limit_bytes=32 * 1024 * 1024),
    )(q_p.reshape(n_pad, 1), psi_p.reshape(n_pad, 1), eid_p.reshape(n_pad, 1),
      q_p.reshape(1, n_pad), psi_p.reshape(1, n_pad), eid_p.reshape(1, n_pad))

    sq_sum = jnp.sum(sq_part)
    cnt = jnp.sum(cnt_part)
    pairwise = jnp.where(
        cnt > 0.0,
        (sq_sum / jnp.maximum(cnt, 1.0)) * jnp.float32(mse_loss_weight_multiplier),
        jnp.float32(0.0))
    return bce + pairwise


def _reference(pred, psi, eid, thr, mult, use_bce_only):
    x = pred.reshape(-1).astype(jnp.float32)
    y = psi.reshape(-1).astype(jnp.float32)
    bce = jnp.mean(jnp.maximum(x, 0.0) - x * y + jnp.log1p(jnp.exp(-jnp.abs(x))))
    if use_bce_only:
        return bce
    z = jnp.clip(y, 1e-7, 1.0 - 1e-7)
    ly = jnp.log(z / (1.0 - z))
    pd = x[:, None] - x[None, :]
    td = ly[:, None] - ly[None, :]
    od = y[:, None] - y[None, :]
    m = (eid[:, None] == eid[None, :]) & (jnp.abs(od) >= thr)
    mf = m.astype(jnp.float32)
    c = jnp.sum(mf)
    mse = jnp.sum((pd - td) ** 2 * mf) / jnp.maximum(c, 1.0)
    return bce + jnp.where(c > 0.0, mse * mult, 0.0)


if __name__ == "__main__":
    key = jax.random.PRNGKey(0)
    k1, k2, k3, k4, k5 = jax.random.split(key, 5)

    dPSI_threshold = 0.05
    mult = 10.0

    # --- small test (matches the module's expected usage) ---
    N = 8
    pred_psi_val = jax.random.normal(k1, (N,), dtype=jnp.float32)              # logits
    psi_val = jax.nn.sigmoid(jax.random.normal(k2, (N,), dtype=jnp.float32))   # in (0,1)
    event_id = jnp.array([0, 0, 0, 1, 1, 2, 2, 2], dtype=jnp.int32)

    loss = pairwise_mse_bce_loss(
        pred_psi_val, psi_val, event_id,
        dPSI_threshold=dPSI_threshold, mse_loss_weight_multiplier=mult,
        use_BCE_loss_only=False)
    loss = jax.block_until_ready(loss)

    loss_bce_only = pairwise_mse_bce_loss(
        pred_psi_val, psi_val, event_id,
        dPSI_threshold=dPSI_threshold, mse_loss_weight_multiplier=mult,
        use_BCE_loss_only=True)
    loss_bce_only = jax.block_until_ready(loss_bce_only)

    ref = _reference(pred_psi_val, psi_val, event_id, dPSI_threshold, mult, False)
    ref_bce = _reference(pred_psi_val, psi_val, event_id, dPSI_threshold, mult, True)
    assert jnp.allclose(loss, ref, rtol=1e-5, atol=1e-5), (loss, ref)
    assert jnp.allclose(loss_bce_only, ref_bce, rtol=1e-5, atol=1e-5), (loss_bce_only, ref_bce)

    # --- larger test exercising the 2-D grid (multiple row/col blocks) ---
    N2 = 700
    pred2 = jax.random.normal(k3, (N2,), dtype=jnp.float32)
    psi2 = jax.nn.sigmoid(jax.random.normal(k4, (N2,), dtype=jnp.float32))
    eid2 = jax.random.randint(k5, (N2,), 0, 40, dtype=jnp.int32)

    loss2 = pairwise_mse_bce_loss(
        pred2, psi2, eid2,
        dPSI_threshold=dPSI_threshold, mse_loss_weight_multiplier=mult,
        use_BCE_loss_only=False)
    loss2 = jax.block_until_ready(loss2)
    ref2 = _reference(pred2, psi2, eid2, dPSI_threshold, mult, False)
    assert jnp.allclose(loss2, ref2, rtol=1e-4, atol=1e-4), (loss2, ref2)

    print("KERNEL_OK")
</pallas_src>

<mosaic_0001>
module attributes {stable_mosaic.version = 11 : i64} {
  func.func @_pairwise_kernel(%arg0: i32, %arg1: i32, %arg2: memref<8x1xf32, #tpu.memory_space<vmem>>, %arg3: memref<8x1xf32, #tpu.memory_space<vmem>>, %arg4: memref<8x1xi32, #tpu.memory_space<vmem>>, %arg5: memref<1x128xf32, #tpu.memory_space<vmem>>, %arg6: memref<1x128xf32, #tpu.memory_space<vmem>>, %arg7: memref<1x128xi32, #tpu.memory_space<vmem>>, %arg8: memref<8x128xf32, #tpu.memory_space<vmem>>, %arg9: memref<8x128xf32, #tpu.memory_space<vmem>>) attributes {dimension_semantics = [#tpu.dimension_semantics<parallel>, #tpu.dimension_semantics<arbitrary>], iteration_bounds = array<i64: 16, 1>, scalar_prefetch = 0 : i64, scratch_operands = 0 : i64, tpu.core_type = #tpu.core_type<tc>, window_params = [{transform_indices = @transform_0, window_bounds = array<i64: 8, 1>}, {transform_indices = @transform_1, window_bounds = array<i64: 8, 1>}, {transform_indices = @transform_2, window_bounds = array<i64: 8, 1>}, {transform_indices = @transform_3, window_bounds = array<i64: 1, 128>}, {transform_indices = @transform_4, window_bounds = array<i64: 1, 128>}, {transform_indices = @transform_5, window_bounds = array<i64: 1, 128>}, {transform_indices = @transform_6, window_bounds = array<i64: 8, 128>}, {transform_indices = @transform_7, window_bounds = array<i64: 8, 128>}]} {
    %c0_i32 = arith.constant 0 : i32
    %0 = arith.cmpi eq, %arg1, %c0_i32 : i32
    %1 = arith.extui %0 : i1 to i32
    %c0_i32_0 = arith.constant 0 : i32
    %2 = arith.cmpi ne, %1, %c0_i32_0 : i32
    scf.if %2 {
      %cst_25 = arith.constant 0.000000e+00 : f32
      %38 = vector.broadcast %cst_25 : f32 to vector<8x128xf32>
      %c0_26 = arith.constant 0 : index
      %c0_27 = arith.constant 0 : index
      %39 = vector.load %arg8[%c0_26, %c0_27] : memref<8x128xf32, #tpu.memory_space<vmem>>, vector<8x128xf32>
      tpu.vector_store %arg8[%c0_26, %c0_27], %38 {strides = array<i32>} : memref<8x128xf32, #tpu.memory_space<vmem>>, vector<8x128xf32>,
      %cst_28 = arith.constant 0.000000e+00 : f32
      %40 = vector.broadcast %cst_28 : f32 to vector<8x128xf32>
      %c0_29 = arith.constant 0 : index
      %c0_30 = arith.constant 0 : index
      %41 = vector.load %arg9[%c0_29, %c0_30] : memref<8x128xf32, #tpu.memory_space<vmem>>, vector<8x128xf32>
      tpu.vector_store %arg9[%c0_29, %c0_30], %40 {strides = array<i32>} : memref<8x128xf32, #tpu.memory_space<vmem>>, vector<8x128xf32>,
    } else {
    }
    %c0 = arith.constant 0 : index
    %c0_1 = arith.constant 0 : index
    %3 = vector.load %arg2[%c0, %c0_1] : memref<8x1xf32, #tpu.memory_space<vmem>>, vector<8x1xf32>
    %c0_2 = arith.constant 0 : index
    %c0_3 = arith.constant 0 : index
    %4 = vector.load %arg5[%c0_2, %c0_3] : memref<1x128xf32, #tpu.memory_space<vmem>>, vector<1x128xf32>
    %c0_4 = arith.constant 0 : index
    %c0_5 = arith.constant 0 : index
    %5 = vector.load %arg3[%c0_4, %c0_5] : memref<8x1xf32, #tpu.memory_space<vmem>>, vector<8x1xf32>
    %c0_6 = arith.constant 0 : index
    %c0_7 = arith.constant 0 : index
    %6 = vector.load %arg6[%c0_6, %c0_7] : memref<1x128xf32, #tpu.memory_space<vmem>>, vector<1x128xf32>
    %c0_8 = arith.constant 0 : index
    %c0_9 = arith.constant 0 : index
    %7 = vector.load %arg4[%c0_8, %c0_9] : memref<8x1xi32, #tpu.memory_space<vmem>>, vector<8x1xi32>
    %c0_10 = arith.constant 0 : index
    %c0_11 = arith.constant 0 : index
    %8 = vector.load %arg7[%c0_10, %c0_11] : memref<1x128xi32, #tpu.memory_space<vmem>>, vector<1x128xi32>
    %9 = vector.broadcast %3 : vector<8x1xf32> to vector<8x128xf32>
    %10 = vector.broadcast %4 : vector<1x128xf32> to vector<8x128xf32>
    %11 = arith.subf %9, %10 : vector<8x128xf32>
    %12 = vector.broadcast %7 : vector<8x1xi32> to vector<8x128xi32>
    %13 = vector.broadcast %8 : vector<1x128xi32> to vector<8x128xi32>
    %14 = arith.cmpi eq, %12, %13 : vector<8x128xi32>
    %15 = vector.broadcast %5 : vector<8x1xf32> to vector<8x128xf32>
    %16 = vector.broadcast %6 : vector<1x128xf32> to vector<8x128xf32>
    %17 = arith.subf %15, %16 : vector<8x128xf32>
    %18 = math.absf %17 : vector<8x128xf32>
    %cst = arith.constant 5.000000e-02 : f32
    %19 = vector.broadcast %cst : f32 to vector<8x128xf32>
    %20 = arith.cmpf oge, %18, %19 : vector<8x128xf32>
    %21 = arith.andi %14, %20 : vector<8x128xi1>
    %22 = arith.mulf %11, %11 : vector<8x128xf32>
    %cst_12 = arith.constant 0.000000e+00 : f32
    %23 = vector.broadcast %cst_12 : f32 to vector<8x128xf32>
    %24 = arith.select %21, %22, %23 : vector<8x128xi1>, vector<8x128xf32>
    %cst_13 = arith.constant 1.000000e+00 : f32
    %cst_14 = arith.constant 0.000000e+00 : f32
    %25 = vector.broadcast %cst_13 : f32 to vector<8x128xf32>
    %26 = vector.broadcast %cst_14 : f32 to vector<8x128xf32>
    %27 = arith.select %21, %25, %26 : vector<8x128xi1>, vector<8x128xf32>
    %c0_15 = arith.constant 0 : index
    %c0_16 = arith.constant 0 : index
    %28 = vector.load %arg8[%c0_15, %c0_16] : memref<8x128xf32, #tpu.memory_space<vmem>>, vector<8x128xf32>
    %29 = vector.shape_cast %24 : vector<8x128xf32> to vector<1x8x128xf32>
    %cst_17 = arith.constant dense<0.000000e+00> : vector<8x128xf32>
    %30 = vector.multi_reduction <add>, %29, %cst_17 [0] : vector<1x8x128xf32> to vector<8x128xf32>
    %31 = arith.addf %28, %30 : vector<8x128xf32>
    %c0_18 = arith.constant 0 : index
    %c0_19 = arith.constant 0 : index
    %32 = vector.load %arg8[%c0_18, %c0_19] : memref<8x128xf32, #tpu.memory_space<vmem>>, vector<8x128xf32>
    tpu.vector_store %arg8[%c0_18, %c0_19], %31 {strides = array<i32>} : memref<8x128xf32, #tpu.memory_space<vmem>>, vector<8x128xf32>,
    %c0_20 = arith.constant 0 : index
    %c0_21 = arith.constant 0 : index
    %33 = vector.load %arg9[%c0_20, %c0_21] : memref<8x128xf32, #tpu.memory_space<vmem>>, vector<8x128xf32>
    %34 = vector.shape_cast %27 : vector<8x128xf32> to vector<1x8x128xf32>
    %cst_22 = arith.constant dense<0.000000e+00> : vector<8x128xf32>
    %35 = vector.multi_reduction <add>, %34, %cst_22 [0] : vector<1x8x128xf32> to vector<8x128xf32>
    %36 = arith.addf %33, %35 : vector<8x128xf32>
    %c0_23 = arith.constant 0 : index
    %c0_24 = arith.constant 0 : index
    %37 = vector.load %arg9[%c0_23, %c0_24] : memref<8x128xf32, #tpu.memory_space<vmem>>, vector<8x128xf32>
    tpu.vector_store %arg9[%c0_23, %c0_24], %36 {strides = array<i32>} : memref<8x128xf32, #tpu.memory_space<vmem>>, vector<8x128xf32>,
    return
  }
  func.func @transform_0(%arg0: i32, %arg1: i32) -> (i32, i32) {
    %c0_i32 = arith.constant 0 : i32
    %c0_i32_0 = arith.constant 0 : i32
    return %arg0, %c0_i32 : i32, i32
  }
  func.func @transform_1(%arg0: i32, %arg1: i32) -> (i32, i32) {
    %c0_i32 = arith.constant 0 : i32
    %c0_i32_0 = arith.constant 0 : i32
    return %arg0, %c0_i32 : i32, i32
  }
  func.func @transform_2(%arg0: i32, %arg1: i32) -> (i32, i32) {
    %c0_i32 = arith.constant 0 : i32
    %c0_i32_0 = arith.constant 0 : i32
    return %arg0, %c0_i32 : i32, i32
  }
  func.func @transform_3(%arg0: i32, %arg1: i32) -> (i32, i32) {
    %c0_i32 = arith.constant 0 : i32
    %c0_i32_0 = arith.constant 0 : i32
    return %c0_i32, %arg1 : i32, i32
  }
  func.func @transform_4(%arg0: i32, %arg1: i32) -> (i32, i32) {
    %c0_i32 = arith.constant 0 : i32
    %c0_i32_0 = arith.constant 0 : i32
    return %c0_i32, %arg1 : i32, i32
  }
  func.func @transform_5(%arg0: i32, %arg1: i32) -> (i32, i32) {
    %c0_i32 = arith.constant 0 : i32
    %c0_i32_0 = arith.constant 0 : i32
    return %c0_i32, %arg1 : i32, i32
  }
  func.func @transform_6(%arg0: i32, %arg1: i32) -> (i32, i32) {
    %c0_i32 = arith.constant 0 : i32
    %c0_i32_0 = arith.constant 0 : i32
    return %arg0, %c0_i32 : i32, i32
  }
  func.func @transform_7(%arg0: i32, %arg1: i32) -> (i32, i32) {
    %c0_i32 = arith.constant 0 : i32
    %c0_i32_0 = arith.constant 0 : i32
    return %arg0, %c0_i32 : i32, i32
  }
}

</mosaic_0001>

<bundles_post_ra>
// kernel: tpu_custom_call.1
= control target key start
LH: loop header
LB: loop body
LE: loop exit
PB: predicated region body
PF: predicated region fallthrough
CT: control target
= control target key end

     0   :  { %s1030_s0 = inlined_call_operand.vmem [shape: f32[128,1], index: 0, kind: input, shape index: {}]   ;;  %s1031_s1 = inlined_call_operand.vmem [shape: f32[128,1], index: 1, kind: input, shape index: {}]   ;;  %s1032_s2 = inlined_call_operand.vmem [shape: s32[128,1], index: 2, kind: input, shape index: {}]   ;;  %s1033_s3 = inlined_call_operand.vmem [shape: f32[1,128], index: 3, kind: input, shape index: {}]   ;;  %s1034_s4 = inlined_call_operand.vmem [shape: f32[1,128], index: 4, kind: input, shape index: {}]   ;;  %s1035_s5 = inlined_call_operand.vmem [shape: s32[1,128], index: 5, kind: input, shape index: {}]   ;;  %s1036_s6 = inlined_call_operand.hbm [shape: f32[128,128], index: 6, kind: output, shape index: {0}]   ;;  %s1037_s7 = inlined_call_operand.hbm [shape: f32[128,128], index: 7, kind: output, shape index: {1}]  }
   0x1   :  { %1038 = sst [smem:[#allocation8_spill]] %s1030_s0 }
   0x2   :  { %1039 = sst [smem:[#allocation9_spill]] %s1031_s1 }
   0x3   :  { %13 = vsyncpa [#allocation3], 0 }
   0x4   :  { %15 = vsyncpa [#allocation3 + $0x1], 0 }
   0x5   :  { %16 = vsyncpa [#allocation5], 0 }
   0x6   :  { %18 = vsyncpa [#allocation5 + $0x1], 0  ;;  %s860_s24 = smov 0   ;;  %s862_s25 = smov 0  }
   0x7   :  { %s864_s26 = smov 0   ;;  %s866_s27 = smov 0  }
   0x8   :  { %s868_s28 = smov 0   ;;  %s870_s29 = smov 0  }
   0x9 LB: > { %s622_s30 = sadd.s32 4294967295, %s814_s29   ;;  %s623_s8 = sadd.s32 4294967294, %s814_s29   ;;  %s814_s29 = sphi %s870_s29, %s24_s29   ;;  %s810_s28 = sphi %s868_s28, %s1050_s28   ;;  %s806_s27 = sphi %s866_s27, %s1049_s27   ;;  %s802_s26 = sphi %s864_s26, %s1048_s26   ;;  %s798_s25 = sphi %s862_s25, %s1047_s25   ;;  %s794_s24 = sphi %s860_s24, %s1046_s24  }
   0xa   : > { %s36_s9 = sadd.s32 1, %s810_s28  ;;  %s199_s10 = sadd.s32 1, %s802_s26 }
   0xb   : > { %p38_p0 = scmp.ge.s32.totalorder %s36_s9, 16  ;;  %p209_p1 = scmp.ne.s32.totalorder %s802_s26, %s798_s25 }
   0xc   : > { %p210_p2 = scmp.eq.s32.totalorder %s622_s30, 15  ;;  %p215_p3 = scmp.ne.s32.totalorder %s798_s25, %s794_s24 }
   0xd   : > { %s1052_s9 = smov (%p38_p0, %s36_s9), 0  ;;  %p216_p5 = scmp.eq.s32.totalorder %s623_s8, 15 }
   0xe   : > { %p900_p4 = por %p210_p2, %p209_p1  ;;  %s196_s12 = ssub.s32 %s810_s28, %s1052_s9 }
   0xf   : > { %p629_p6 = scmp.ge.s32.totalorder %s814_s29, 1  ;;  %p197_p7 = scmp.eq.s32.totalorder %s196_s12, 0 }
  0x10   : > { %p907_p8 = por %p216_p5, %p215_p3  ;;  %p299_p9 = scmp.lt.s32.totalorder %s814_s29, 17 }
  0x11   : > { %s913_s14 = scalar_select %p197_p7, %s802_s26, %s199_s10  }
  0x12   : > { %p300_p10 = pnand %p629_p6, %p299_p9 }
  0x13   : > { %p352_p11 = scmp.lt.s32.totalorder (!%p300_p10), %s806_s27, 15  ;;  %s1042_s1 = sld [smem:[#allocation9_spill]] (!%p300_p10) }
  0x14   : > { %303 = sbr.rel (%p300_p10) target bundleno = 197 (0xc5), region = 44  ;;  %s1043_s0 = sld [smem:[#allocation8_spill]] (!%p300_p10) }
  0x15   : > { %s927_s10 = sand.u32 (!%p300_p10), 1, %s798_s25   ;;  %s640_s21 = sshll.u32 (!%p300_p10), %s806_s27, 7 }
  0x16   : > { %s630_s17 = sshll.u32 (!%p300_p10), %s927_s10, 3  ;;  %s818_s12 = smov (!%p300_p10), [#allocation4]  }
  0x17   : > { %s946_s30 = scalar_lea.vmem (!%p300_p10), [#allocation2], %s630_s17 }
  0x19   : > { %v816_v0 = vmov 0   ;;  %s353_s15 = scalar_select %p352_p11, %s806_s27, 15  ;;  %v637_v4 = vld [vmem:[%s1034_s4] ss:$0 sm:$0xff]  ;;  %v817_v14 = vmov 0.0  }
  0x1a   : > { %706 = vset.pattern.permute.xlu0 %v816_v0  ;;  %707 = vset.pattern.permute.xlu1 %v816_v0  ;;  %v636_v6 = vld [vmem:[%s1035_s5] ss:$0 sm:$0xff]  ;;  %s952_s27 = scalar_lea.hbm %s1037_s7, %s640_s21 }
  0x1b   : > { %s632_s16 = sshll.u32 %s353_s15, 3  ;;  %v635_v9 = vld [vmem:[%s1033_s3] ss:$0 sm:$0xff]  ;;  %s712_s15 = sshll.u32 %s818_s12, 4  ;;  %s713_s15 = int_to_ptr.vmem [resolvable:$false] %s712_s15 }
  0x1c   : > { %s359_s19 = scalar_lea.vmem %s1042_s1, %s632_s16  ;;  %s363_s22 = scalar_lea.vmem %s1032_s2, %s632_s16 }
  0x1d   : > { %v381_v1 = vld [vmem:[%s359_s19] sm:$0xff]  ;;  %s355_s8 = scalar_lea.vmem %s1043_s0, %s632_s16  ;;  %s437_s16 = scalar_lea.sflag [#allocation5], %s927_s10 }
  0x1e   : > { %v383_v2 = vld [vmem:[%s363_s22] sm:$0xff]  ;;  %407 = vperm.xlu0 %706, %v381_v1   ;;  %s351_s22 = scalar_lea.vmem [#allocation4], %s630_s17  ;;  %s961_s17 = scalar_lea.hbm %s1036_s6, %s640_s21 }
  0x1f   : > { %398 = vperm.xlu1 %707, %v383_v2   ;;  %v379_v3 = vld [vmem:[%s355_s8] sm:$0xff]  ;;  %s463_s23 = sshll.u32 %s351_s22, 4  ;;  %s450_s8 = sshll.u32 %s946_s30, 4  ;;  %s954_s23 = int_to_ptr.vmem [resolvable:$true] %s463_s23  ;;  %s963_s8 = int_to_ptr.vmem [resolvable:$true] %s450_s8 }
  0x20   : > { %s708_s20 = scalar_lea.vmem %s954_s23, 128  ;;  %s714_s0 = scalar_lea.vmem %s713_s15, 256 }
  0x21   : > { %p709_p12 = scmp.ne.s32.totalorder %s954_s23, %s708_s20  ;;  %p715_p1 = scmp.lt.s32.totalorder %s954_s23, %s713_s15 }
  0x22   : > { %387 = vperm.xlu0 %706, %v379_v3   ;;  %p716_p2 = scmp.lt.s32.totalorder %s714_s0, %s708_s20 }
  0x23   : > { %p710_p13 = pnand %p709_p12, %p900_p4 }
  0x24   : > { %p717_p3 = por %p716_p2, %p715_p1 }
  0x25   : > { %p711_p0 = pneg %p710_p13 }
  0x27   : > { %p718_p5 = pnand %p717_p3, %p711_p0 }
  0x99   : > { %v408_v5 = vpop.permute.xlu0 %407 }
  0x9a   : > { %v399_v7 = vpop.permute.xlu1 %398  ;;  %v416_v8 = vsub.f32 %v408_v5, %v637_v4 }
  0x9b   : > { %vm404_vm0 = vcmp.eq.s32.totalorder %v399_v7, %v636_v6 }
  0x9c   : > { %v417_v10 = vand.u32 2147483647, %v416_v8 }
  0x9d   : > { %v388_v11 = vpop.permute.xlu0 %387 }
  0x9e   : > { %vm418_vm1 = vcmp.ge.f32.partialorder %v417_v10, 0.05  ;;  %v396_v12 = vsub.f32 %v388_v11, %v635_v9 }
  0x9f   : > { %vm940_vm2 = vmand %vm404_vm0, %vm418_vm1 }
  0xa0   : > { %v422_v15 = vsel %vm940_vm2, 1.0, %v817_v14  ;;  %v420_v16 = vmul.f32 %v396_v12, %v396_v12 }
  0xa1   : > { %430 = vst [vmem:[%s351_s22] sm:$0xff] %v422_v15 }
  0xa2   : > { %v421_v17 = vsel %vm940_vm2, %v420_v16, 0.0 }
  0xa3   : > { %721 = shalt.err (!%p718_p5)
}
  0xa4   : > { %s722_s21 = scalar_lea.hbm %s952_s27, 128  ;;  %s726_s19 = scalar_lea.hbm %s1037_s7, 2048 }
  0xa5   : > { %p723_p6 = scmp.ne.s32.totalorder %s952_s27, %s722_s21  ;;  %p727_p10 = scmp.lt.s32.totalorder %s952_s27, %s1037_s7 }
  0xa6   : > { %p728_p11 = scmp.lt.s32.totalorder %s726_s19, %s722_s21 }
  0xa7   : > { %p724_p7 = pnand %p723_p6, %p900_p4 }
  0xa8   : > { %p729_p12 = por %p728_p11, %p727_p10 }
  0xa9   : > { %p725_p9 = pneg %p724_p7 }
  0xab   : > { %p730_p13 = pnand %p729_p12, %p725_p9 }
  0xad   : > { %733 = shalt.err (!%p730_p13)
}
  0xae   : > { %645 = dma.vmem_to_hbm [thread:$0]  (%p900_p4), %s954_s23, 128, %s952_s27, %s437_s16   ;;  %426 = vst [vmem:[%s946_s30] sm:$0xff] %v421_v17 }
  0xaf   : > { %s432_s0 = scalar_lea.sflag [#allocation3], %s927_s10  ;;  %s734_s20 = scalar_lea.vmem %s963_s8, 128 }
  0xb0   : > { %p735_p0 = scmp.ne.s32.totalorder %s963_s8, %s734_s20  ;;  %s819_s1 = smov [#allocation2]  }
  0xb1   : > { %s738_s15 = sshll.u32 %s819_s1, 4  ;;  %s739_s15 = int_to_ptr.vmem [resolvable:$false] %s738_s15 }
  0xb2   : > { %p736_p1 = pnand %p735_p0, %p900_p4  ;;  %s740_s21 = scalar_lea.vmem %s739_s15, 256 }
  0xb3   : > { %p741_p3 = scmp.lt.s32.totalorder %s963_s8, %s739_s15  ;;  %p742_p5 = scmp.lt.s32.totalorder %s740_s21, %s734_s20 }
  0xb4   : > { %p737_p2 = pneg %p736_p1 }
  0xb5   : > { %p743_p6 = por %p742_p5, %p741_p3 }
  0xb7   : > { %p744_p7 = pnand %p743_p6, %p737_p2 }
  0xb9   : > { %747 = shalt.err (!%p744_p7)
}
  0xba   : > { %s748_s23 = scalar_lea.hbm %s961_s17, 128  ;;  %s752_s27 = scalar_lea.hbm %s1036_s6, 2048 }
  0xbb   : > { %p749_p9 = scmp.ne.s32.totalorder %s961_s17, %s748_s23  ;;  %p753_p12 = scmp.lt.s32.totalorder %s961_s17, %s1036_s6 }
  0xbc   : > { %p754_p13 = scmp.lt.s32.totalorder %s752_s27, %s748_s23 }
  0xbd   : > { %p750_p10 = pnand %p749_p9, %p900_p4 }
  0xbe   : > { %p755_p0 = por %p754_p13, %p753_p12 }
  0xbf   : > { %p751_p11 = pneg %p750_p10 }
  0xc1   : > { %p756_p1 = pnand %p755_p0, %p751_p11 }
  0xc3   : > { %759 = shalt.err (!%p756_p1)
}
  0xc4   : > { %644 = dma.vmem_to_hbm [thread:$0]  (%p900_p4), %s963_s8, 128, %s961_s17, %s432_s0  }
  0xc5 PF: > { %p655_p2 = scmp.ge.s32.totalorder %s814_s29, 2  ;;  %s475_s18 = sand.u32 1, %s794_s24  }
  0xc6   : > { %s476_s19 = scalar_lea.sflag [#allocation3], %s475_s18 }
  0xc7   : > { %p649_p3 = pnand %p655_p2, %p907_p8 }
  0xc9   : > { %p650_p5 = pneg %p649_p3 }
  0xcb   : > { %785 = dma.done.wait (%p650_p5), %s476_s19, 128  }
  0xcc   : > { %787 = vsyncadd (%p650_p5), %s476_s19, 4294967168  ;;  %s485_s12 = scalar_lea.sflag [#allocation5], %s475_s18 }
  0xcd   : > { %789 = dma.done.wait (%p650_p5), %s485_s12, 128  }
  0xce   : > { %791 = vsyncadd (%p650_p5), %s485_s12, 4294967168  ;;  %s24_s29 = sadd.s32 1, %s814_s29   ;;  %s1046_s24 = smov %s798_s25 }
  0xcf   : > { %p21_p6 = scmp.ge.s32.totalorder %s24_s29, 18   ;;  %s1047_s25 = smov %s802_s26 }
  0xd0   : > { %s1048_s26 = smov %s913_s14  ;;  %s1049_s27 = smov %s810_s28 }
  0xd1   : > { %s1050_s28 = smov %s1052_s9  ;;  %23 = sbr.rel (!%p21_p6) target bundleno = 9 (0x9), region = 115 }
  0xd6   :  { %490 = vsyncpa [#allocation3], 1 }
  0xd7   :  { %492 = vsyncpa [#allocation3 + $0x1], 1 }
  0xd8   :  { %493 = vsyncpa [#allocation5], 1 }
  0xd9   :  { %495 = vsyncpa [#allocation5 + $0x1], 1 }

</bundles_post_ra>
